<compile_context>
chip_gen: v6e
topology: v6e:2x2x1
jax: 0.10.0
libtpu: 0.0.40
codegen_flags: <defaults>
</compile_context>

<pallas_src>
import functools

import jax
import jax.numpy as jnp
from jax.experimental import pallas as pl
from jax.experimental.pallas import tpu as pltpu

BN_EPS = 1e-5      # nn.BatchNorm1d default
NORM_EPS = 1e-12   # F.normalize default


# --------------------------------- small helpers ---------------------------------

def _round_up(x, m):
    return ((x + m - 1) // m) * m


def _vmem_capacity_bytes():
    try:
        return int(pltpu.get_tpu_info().vmem_capacity_bytes)
    except Exception:
        return 64 << 20   # v7x per-TC floor; conservative fallback


def _vmem_limit(estimated_bytes):
    cap = _vmem_capacity_bytes()
    return int(min(max(2 * int(estimated_bytes), 32 << 20), int(0.9 * cap)))


def _l2_normalize(c):
    # F.normalize(dim=1): c / max(||c||, eps) == c * rsqrt(max(sum(c^2), eps^2))
    sumsq = jnp.sum(c * c, axis=1, keepdims=True)
    return c * jax.lax.rsqrt(jnp.maximum(sumsq, NORM_EPS * NORM_EPS))


# --------------------------------- kernels ---------------------------------

def head_linear_kernel(x_ref, w_ref, b_ref, o_ref):
    """Linear(dim_in, feat_dim) -> L2-normalize, on one batch tile."""
    x = x_ref[...].astype(w_ref.dtype)                 # cast to MXU operand dtype in-kernel
    c = jnp.dot(x, w_ref[...], preferred_element_type=jnp.float32) + b_ref[...]
    o_ref[...] = _l2_normalize(c).astype(o_ref.dtype)


def head_mlp_whole_batch_kernel(x_ref, w1_ref, b1_ref, g_ref, beta_ref, w2_ref, b2_ref, o_ref):
    """Whole batch in one block: Linear -> ReLU -> BN(batch stats) -> Linear -> L2-normalize."""
    x = x_ref[...].astype(w1_ref.dtype)
    h = jnp.dot(x, w1_ref[...], preferred_element_type=jnp.float32) + b1_ref[...]
    h = jnp.maximum(h, 0.0)

    # one-pass folded BatchNorm1d (training-mode biased batch variance), var clamped >= 0
    mean = jnp.mean(h, axis=0, keepdims=True)
    mean_sq = jnp.mean(h * h, axis=0, keepdims=True)
    var = jnp.maximum(mean_sq - mean * mean, 0.0)
    scale = g_ref[...] * jax.lax.rsqrt(var + BN_EPS)
    shift = beta_ref[...] - mean * scale
    hn = h * scale + shift

    c = jnp.dot(hn.astype(w2_ref.dtype), w2_ref[...],
                preferred_element_type=jnp.float32) + b2_ref[...]
    o_ref[...] = _l2_normalize(c).astype(o_ref.dtype)


def mlp_pass1_kernel(x_ref, w1_ref, b1_ref, h_ref, stats_ref, *, batch, tile):
    """Pass 1 (batch-tiled): h = relu(x @ W1 + b1); masked per-tile partial sum / sum-of-squares."""
    x = x_ref[...].astype(w1_ref.dtype)
    h = jnp.dot(x, w1_ref[...], preferred_element_type=jnp.float32) + b1_ref[...]
    h = jnp.maximum(h, 0.0)

    # mask rows padded past the real batch out of the BN statistics
    row0 = pl.program_id(0) * tile
    rows = jax.lax.broadcasted_iota(jnp.int32, h.shape, 0) + row0
    hm = jnp.where(rows < batch, h, 0.0)
    psum = jnp.sum(hm, axis=0, keepdims=True)            # (1, D)
    psumsq = jnp.sum(hm * hm, axis=0, keepdims=True)      # (1, D)

    # pack [sum; sumsq; zeros] into an (8, D) sublane-aligned stats block
    sub = jax.lax.broadcasted_iota(jnp.int32, (8, h.shape[1]), 0)
    stats = jnp.where(sub == 0, psum, jnp.where(sub == 1, psumsq, 0.0))
    stats_ref[0] = stats
    h_ref[...] = h.astype(h_ref.dtype)


def mlp_pass2_kernel(h_ref, scale_ref, shift_ref, w2_ref, b2_ref, o_ref):
    """Pass 2 (batch-tiled): BN apply (folded scale/shift) -> Linear -> L2-normalize."""
    h = h_ref[...].astype(jnp.float32)
    hn = h * scale_ref[...] + shift_ref[...]
    c = jnp.dot(hn.astype(w2_ref.dtype), w2_ref[...],
                preferred_element_type=jnp.float32) + b2_ref[...]
    o_ref[...] = _l2_normalize(c).astype(o_ref.dtype)


# ------------------------------ parameter prep (done once, off the hot path) ------------------------------

def prepare_params(params, mxu_dtype=jnp.bfloat16):
    """Pre-transpose weights to (in, out) layout and pre-cast to the MXU operand dtype."""
    def row(v):
        return jnp.asarray(v, jnp.float32).reshape(1, -1)

    p = {}
    if 'w1' in params:
        p['w1_t'] = jnp.asarray(params['w1']).T.astype(mxu_dtype)   # (D, D)
        p['b1'] = row(params['b1'])
        p['gamma'] = row(params['gamma'])
        p['beta'] = row(params['beta'])
        p['w2_t'] = jnp.asarray(params['w2']).T.astype(mxu_dtype)   # (D, F)
        p['b2'] = row(params['b2'])
    if 'w' in params:
        p['w_t'] = jnp.asarray(params['w']).T.astype(mxu_dtype)     # (D, F)
        p['b'] = row(params['b'])
    return p


# ------------------------------ wrappers ------------------------------

def _linear_head_forward(x, pp, batch_tile=512):
    B, D = x.shape
    w, b = pp['w_t'], pp['b']
    F_ = w.shape[1]

    Bp = _round_up(B, 8)
    tile = _round_up(min(batch_tile, Bp), 8)
    Bp = _round_up(Bp, tile)
    xp = x if Bp == B else jnp.pad(x, ((0, Bp - B), (0, 0)))

    est = (2 * tile * D * x.dtype.itemsize        # double-buffered input tiles
           + D * F_ * w.dtype.itemsize            # resident weight
           + 2 * tile * F_ * 4                    # double-buffered output tiles
           + 2 * tile * max(D, F_) * 4)           # in-kernel temporaries
    out = pl.pallas_call(
        head_linear_kernel,
        out_shape=jax.ShapeDtypeStruct((Bp, F_), jnp.float32),
        grid=(Bp // tile,),
        in_specs=[
            pl.BlockSpec((tile, D), lambda i: (i, 0)),   # batch-tiled, double-buffered DMA
            pl.BlockSpec((D, F_), lambda i: (0, 0)),     # weight resident across grid
            pl.BlockSpec((1, F_), lambda i: (0, 0)),
        ],
        out_specs=pl.BlockSpec((tile, F_), lambda i: (i, 0)),
        compiler_params=pltpu.CompilerParams(
            dimension_semantics=("parallel",),
            vmem_limit_bytes=_vmem_limit(est)),
    )(xp, w, b)
    return out[:B]


def _mlp_whole_batch_bytes(B, D, F_, w_itemsize, x_itemsize):
    return (B * D * x_itemsize + B * D * w_itemsize      # x + in-kernel cast copy
            + D * D * w_itemsize + D * F_ * w_itemsize   # weights
            + 3 * B * D * 4                              # h, h*h, hn f32 temporaries
            + 2 * B * F_ * 4)                            # c + output


def _mlp_head_forward_whole_batch(x, pp):
    B, D = x.shape
    F_ = pp['w2_t'].shape[1]
    est = _mlp_whole_batch_bytes(B, D, F_, pp['w1_t'].dtype.itemsize, x.dtype.itemsize)

    def vmem():
        return pl.BlockSpec(memory_space=pltpu.MemorySpace.VMEM)

    return pl.pallas_call(
        head_mlp_whole_batch_kernel,
        out_shape=jax.ShapeDtypeStruct((B, F_), jnp.float32),
        in_specs=[vmem() for _ in range(7)],
        out_specs=vmem(),
        compiler_params=pltpu.CompilerParams(vmem_limit_bytes=_vmem_limit(est)),
    )(x, pp['w1_t'], pp['b1'], pp['gamma'], pp['beta'], pp['w2_t'], pp['b2'])


def _mlp_head_forward_tiled(x, pp, batch_tile=256):
    B, D = x.shape
    F_ = pp['w2_t'].shape[1]
    mxu_dtype = pp['w1_t'].dtype

    Bp = _round_up(B, 8)
    tile = _round_up(min(batch_tile, Bp), 8)
    Bp = _round_up(Bp, tile)
    num_tiles = Bp // tile
    xp = x if Bp == B else jnp.pad(x, ((0, Bp - B), (0, 0)))

    # ---- pass 1: first matmul + ReLU + masked per-tile BN partial sums ----
    kernel1 = functools.partial(mlp_pass1_kernel, batch=B, tile=tile)
    est1 = (2 * tile * D * x.dtype.itemsize + D * D * mxu_dtype.itemsize
            + 2 * tile * D * mxu_dtype.itemsize + 3 * tile * D * 4 + 2 * 8 * D * 4)
    h, stats = pl.pallas_call(
        kernel1,
        out_shape=(jax.ShapeDtypeStruct((Bp, D), mxu_dtype),
                   jax.ShapeDtypeStruct((num_tiles, 8, D), jnp.float32)),
        grid=(num_tiles,),
        in_specs=[
            pl.BlockSpec((tile, D), lambda i: (i, 0)),
            pl.BlockSpec((D, D), lambda i: (0, 0)),
            pl.BlockSpec((1, D), lambda i: (0, 0)),
        ],
        out_specs=(pl.BlockSpec((tile, D), lambda i: (i, 0)),
                   pl.BlockSpec((1, 8, D), lambda i: (i, 0, 0))),
        compiler_params=pltpu.CompilerParams(
            dimension_semantics=("parallel",),
            vmem_limit_bytes=_vmem_limit(est1)),
    )(xp, pp['w1_t'], pp['b1'])

    # ---- tiny cross-tile reduction + folded BN coefficients (plain XLA, (1, D)) ----
    total = jnp.sum(stats, axis=0)                              # (8, D): row0 = sum, row1 = sumsq
    mean = total[0:1] / float(B)
    var = jnp.maximum(total[1:2] / float(B) - mean * mean, 0.0)
    scale = pp['gamma'] * jax.lax.rsqrt(var + BN_EPS)
    shift = pp['beta'] - mean * scale

    # ---- pass 2: BN apply + second matmul + L2 normalize ----
    est2 = (2 * tile * D * mxu_dtype.itemsize + D * F_ * mxu_dtype.itemsize
            + 2 * tile * F_ * 4 + 2 * tile * max(D, F_) * 4)
    out = pl.pallas_call(
        mlp_pass2_kernel,
        out_shape=jax.ShapeDtypeStruct((Bp, F_), jnp.float32),
        grid=(num_tiles,),
        in_specs=[
            pl.BlockSpec((tile, D), lambda i: (i, 0)),
            pl.BlockSpec((1, D), lambda i: (0, 0)),
            pl.BlockSpec((1, D), lambda i: (0, 0)),
            pl.BlockSpec((D, F_), lambda i: (0, 0)),
            pl.BlockSpec((1, F_), lambda i: (0, 0)),
        ],
        out_specs=pl.BlockSpec((tile, F_), lambda i: (i, 0)),
        compiler_params=pltpu.CompilerParams(
            dimension_semantics=("parallel",),
            vmem_limit_bytes=_vmem_limit(est2)),
    )(h, scale, shift, pp['w2_t'], pp['b2'])
    return out[:B]


def _mlp_head_forward(x, pp, batch_tile=256, force_tiled=False):
    B, D = x.shape
    F_ = pp['w2_t'].shape[1]
    est = _mlp_whole_batch_bytes(B, D, F_, pp['w1_t'].dtype.itemsize, x.dtype.itemsize)
    # Tiled two-pass BN when the whole-batch block would stress VMEM (fatal on v7x's 64 MiB)
    # or when B is large enough that batch tiling / dual-TC sharding pays off.
    if force_tiled or est > _vmem_capacity_bytes() // 2 or B > 4 * batch_tile:
        return _mlp_head_forward_tiled(x, pp, batch_tile)
    return _mlp_head_forward_whole_batch(x, pp)


def head_model_vae_forward(x, prepped_params, head='mlp', batch_tile=None, force_tiled=False):
    """Forward for HeadModelVAE. `prepped_params` comes from prepare_params() (done once)."""
    if head == 'mlp':
        return _mlp_head_forward(x, prepped_params, batch_tile or 256, force_tiled)
    elif head == 'linear':
        return _linear_head_forward(x, prepped_params, batch_tile or 512)
    raise NotImplementedError('head not supported: {}'.format(head))


# ------------------------------ parameter init (PyTorch convention) ------------------------------

def init_params(key, dim_in, feat_dim):
    ks = jax.random.split(key, 6)

    def unif(k, shape, fan_in):
        bound = 1.0 / float(fan_in) ** 0.5
        return jax.random.uniform(k, shape, jnp.float32, -bound, bound)

    return {
        # mlp head
        'w1': unif(ks[0], (dim_in, dim_in), dim_in),
        'b1': unif(ks[1], (dim_in,), dim_in),
        'gamma': jnp.ones((dim_in,), jnp.float32),
        'beta': jnp.zeros((dim_in,), jnp.float32),
        'w2': unif(ks[2], (feat_dim, dim_in), dim_in),
        'b2': unif(ks[3], (feat_dim,), dim_in),
        # linear head
        'w': unif(ks[4], (feat_dim, dim_in), dim_in),
        'b': unif(ks[5], (feat_dim,), dim_in),
    }


# ------------------------------ pure-JAX references (sanity checks) ------------------------------

def _ref_mlp(x, p):
    hp = jax.lax.Precision.HIGHEST
    h = jnp.dot(x, p['w1'].T, precision=hp) + p['b1']
    h = jnp.maximum(h, 0.0)
    mean = jnp.mean(h, axis=0, keepdims=True)
    var = jnp.mean((h - mean) ** 2, axis=0, keepdims=True)
    h = (h - mean) / jnp.sqrt(var + BN_EPS) * p['gamma'] + p['beta']
    c = jnp.dot(h, p['w2'].T, precision=hp) + p['b2']
    n = jnp.sqrt(jnp.sum(c * c, axis=1, keepdims=True))
    return c / jnp.maximum(n, NORM_EPS)


def _ref_linear(x, p):
    hp = jax.lax.Precision.HIGHEST
    c = jnp.dot(x, p['w'].T, precision=hp) + p['b']
    n = jnp.sqrt(jnp.sum(c * c, axis=1, keepdims=True))
    return c / jnp.maximum(n, NORM_EPS)


if __name__ == "__main__":
    B, dim_in, feat_dim = 16, 32, 128

    key = jax.random.PRNGKey(0)
    kx, kp, kx2 = jax.random.split(key, 3)
    x = jax.random.normal(kx, (B, dim_in), jnp.float32)
    x_ragged = jax.random.normal(kx2, (10, dim_in), jnp.float32)   # exercises padded-row masking
    params = init_params(kp, dim_in, feat_dim)

    # --- f32 MXU operands: numerically faithful to the PyTorch reference ---
    pp_f32 = prepare_params(params, mxu_dtype=jnp.float32)
    out_mlp = head_model_vae_forward(x, pp_f32, head='mlp')                           # whole-batch path
    out_mlp_tiled = head_model_vae_forward(x, pp_f32, head='mlp',
                                           batch_tile=8, force_tiled=True)            # two-pass BN path
    out_mlp_ragged = head_model_vae_forward(x_ragged, pp_f32, head='mlp',
                                            batch_tile=8, force_tiled=True)           # padded/masked stats
    out_lin = head_model_vae_forward(x, pp_f32, head='linear')

    # --- bf16 MXU operands (production default on v5e/v6e/v7x), f32 accumulation ---
    pp_bf16 = prepare_params(params, mxu_dtype=jnp.bfloat16)
    out_mlp_bf16 = head_model_vae_forward(x, pp_bf16, head='mlp')
    out_lin_bf16 = head_model_vae_forward(x, pp_bf16, head='linear')

    jax.block_until_ready((out_mlp, out_mlp_tiled, out_mlp_ragged, out_lin,
                           out_mlp_bf16, out_lin_bf16))

    ref_mlp = _ref_mlp(x, params)
    ref_lin = _ref_linear(x, params)
    assert out_mlp.shape == (B, feat_dim) and out_lin.shape == (B, feat_dim)
    assert bool(jnp.all(jnp.isfinite(out_mlp))) and bool(jnp.all(jnp.isfinite(out_lin)))
    assert bool(jnp.allclose(out_mlp, ref_mlp, atol=1e-3, rtol=1e-3))
    assert bool(jnp.allclose(out_mlp_tiled, ref_mlp, atol=1e-3, rtol=1e-3))
    assert bool(jnp.allclose(out_mlp_ragged, _ref_mlp(x_ragged, params), atol=1e-3, rtol=1e-3))
    assert bool(jnp.allclose(out_lin, ref_lin, atol=1e-3, rtol=1e-3))
    # bf16 operands: looser tolerance (f32 accumulation keeps error ~1e-2 on unit-norm outputs)
    assert bool(jnp.all(jnp.isfinite(out_mlp_bf16))) and bool(jnp.all(jnp.isfinite(out_lin_bf16)))
    assert bool(jnp.allclose(out_mlp_bf16, ref_mlp, atol=3e-2, rtol=3e-2))
    assert bool(jnp.allclose(out_lin_bf16, ref_lin, atol=3e-2, rtol=3e-2))

    print("KERNEL_OK")
</pallas_src>

<mosaic_0001>
module attributes {stable_mosaic.version = 11 : i64} {
  func.func @head_mlp_whole_batch_kernel(%arg0: memref<16x32xf32, #tpu.memory_space<vmem>>, %arg1: memref<32x32xf32, #tpu.memory_space<vmem>>, %arg2: memref<1x32xf32, #tpu.memory_space<vmem>>, %arg3: memref<1x32xf32, #tpu.memory_space<vmem>>, %arg4: memref<1x32xf32, #tpu.memory_space<vmem>>, %arg5: memref<32x128xf32, #tpu.memory_space<vmem>>, %arg6: memref<1x128xf32, #tpu.memory_space<vmem>>, %arg7: memref<16x128xf32, #tpu.memory_space<vmem>>) attributes {dimension_semantics = [], scalar_prefetch = 0 : i64, scratch_operands = 0 : i64, tpu.core_type = #tpu.core_type<tc>} {
    %c0 = arith.constant 0 : index
    %c0_0 = arith.constant 0 : index
    %0 = vector.load %arg0[%c0, %c0_0] : memref<16x32xf32, #tpu.memory_space<vmem>>, vector<16x32xf32>
    %c0_1 = arith.constant 0 : index
    %c0_2 = arith.constant 0 : index
    %1 = vector.load %arg1[%c0_1, %c0_2] : memref<32x32xf32, #tpu.memory_space<vmem>>, vector<32x32xf32>
    %cst = arith.constant dense<0.000000e+00> : vector<16x32xf32>
    %2 = tpu.matmul %0, %1, %cst {dimension_numbers = #tpu.dot_dimension_numbers<[1], [0], [0], [1], [0, 0, 1, 1], [], []>} : vector<16x32xf32>, vector<32x32xf32>, vector<16x32xf32> -> vector<16x32xf32>
    %c0_3 = arith.constant 0 : index
    %c0_4 = arith.constant 0 : index
    %3 = vector.load %arg2[%c0_3, %c0_4] : memref<1x32xf32, #tpu.memory_space<vmem>>, vector<1x32xf32>
    %4 = vector.broadcast %3 : vector<1x32xf32> to vector<16x32xf32>
    %5 = arith.addf %2, %4 : vector<16x32xf32>
    %cst_5 = arith.constant 0.000000e+00 : f32
    %6 = vector.broadcast %cst_5 : f32 to vector<16x32xf32>
    %7 = arith.maximumf %5, %6 : vector<16x32xf32>
    %cst_6 = arith.constant dense<0.000000e+00> : vector<32xf32>
    %8 = vector.multi_reduction <add>, %7, %cst_6 [0] : vector<16x32xf32> to vector<32xf32>
    %9 = vector.shape_cast %8 : vector<32xf32> to vector<1x32xf32>
    %cst_7 = arith.constant 1.600000e+01 : f32
    %10 = vector.broadcast %cst_7 : f32 to vector<1x32xf32>
    %11 = arith.divf %9, %10 : vector<1x32xf32>
    %12 = arith.mulf %7, %7 : vector<16x32xf32>
    %cst_8 = arith.constant dense<0.000000e+00> : vector<32xf32>
    %13 = vector.multi_reduction <add>, %12, %cst_8 [0] : vector<16x32xf32> to vector<32xf32>
    %14 = vector.shape_cast %13 : vector<32xf32> to vector<1x32xf32>
    %cst_9 = arith.constant 1.600000e+01 : f32
    %15 = vector.broadcast %cst_9 : f32 to vector<1x32xf32>
    %16 = arith.divf %14, %15 : vector<1x32xf32>
    %17 = arith.mulf %11, %11 : vector<1x32xf32>
    %18 = arith.subf %16, %17 : vector<1x32xf32>
    %cst_10 = arith.constant 0.000000e+00 : f32
    %19 = vector.broadcast %cst_10 : f32 to vector<1x32xf32>
    %20 = arith.maximumf %18, %19 : vector<1x32xf32>
    %c0_11 = arith.constant 0 : index
    %c0_12 = arith.constant 0 : index
    %21 = vector.load %arg3[%c0_11, %c0_12] : memref<1x32xf32, #tpu.memory_space<vmem>>, vector<1x32xf32>
    %cst_13 = arith.constant 9.99999974E-6 : f32
    %22 = vector.broadcast %cst_13 : f32 to vector<1x32xf32>
    %23 = arith.addf %20, %22 : vector<1x32xf32>
    %24 = math.rsqrt %23 : vector<1x32xf32>
    %25 = arith.mulf %21, %24 : vector<1x32xf32>
    %c0_14 = arith.constant 0 : index
    %c0_15 = arith.constant 0 : index
    %26 = vector.load %arg4[%c0_14, %c0_15] : memref<1x32xf32, #tpu.memory_space<vmem>>, vector<1x32xf32>
    %27 = arith.mulf %11, %25 : vector<1x32xf32>
    %28 = arith.subf %26, %27 : vector<1x32xf32>
    %29 = vector.broadcast %25 : vector<1x32xf32> to vector<16x32xf32>
    %30 = arith.mulf %7, %29 : vector<16x32xf32>
    %31 = vector.broadcast %28 : vector<1x32xf32> to vector<16x32xf32>
    %32 = arith.addf %30, %31 : vector<16x32xf32>
    %c0_16 = arith.constant 0 : index
    %c0_17 = arith.constant 0 : index
    %33 = vector.load %arg5[%c0_16, %c0_17] : memref<32x128xf32, #tpu.memory_space<vmem>>, vector<32x128xf32>
    %cst_18 = arith.constant dense<0.000000e+00> : vector<16x128xf32>
    %34 = tpu.matmul %32, %33, %cst_18 {dimension_numbers = #tpu.dot_dimension_numbers<[1], [0], [0], [1], [0, 0, 1, 1], [], []>} : vector<16x32xf32>, vector<32x128xf32>, vector<16x128xf32> -> vector<16x128xf32>
    %c0_19 = arith.constant 0 : index
    %c0_20 = arith.constant 0 : index
    %35 = vector.load %arg6[%c0_19, %c0_20] : memref<1x128xf32, #tpu.memory_space<vmem>>, vector<1x128xf32>
    %36 = vector.broadcast %35 : vector<1x128xf32> to vector<16x128xf32>
    %37 = arith.addf %34, %36 : vector<16x128xf32>
    %38 = arith.mulf %37, %37 : vector<16x128xf32>
    %cst_21 = arith.constant dense<0.000000e+00> : vector<16xf32>
    %39 = vector.multi_reduction <add>, %38, %cst_21 [1] : vector<16x128xf32> to vector<16xf32>
    %40 = vector.shape_cast %39 : vector<16xf32> to vector<16x1xf32>
    %cst_22 = arith.constant 1.000000e-24 : f32
    %41 = vector.broadcast %cst_22 : f32 to vector<16x1xf32>
    %42 = arith.maximumf %40, %41 : vector<16x1xf32>
    %43 = math.rsqrt %42 : vector<16x1xf32>
    %44 = vector.broadcast %43 : vector<16x1xf32> to vector<16x128xf32>
    %45 = arith.mulf %37, %44 : vector<16x128xf32>
    %c0_23 = arith.constant 0 : index
    %c0_24 = arith.constant 0 : index
    %46 = vector.load %arg7[%c0_23, %c0_24] : memref<16x128xf32, #tpu.memory_space<vmem>>, vector<16x128xf32>
    tpu.vector_store %arg7[%c0_23, %c0_24], %45 {strides = array<i32>} : memref<16x128xf32, #tpu.memory_space<vmem>>, vector<16x128xf32>,
    return
  }
}

</mosaic_0001>

<bundles_post_ra>
// kernel: tpu_custom_call.1
= control target key start
LH: loop header
LB: loop body
LE: loop exit
PB: predicated region body
PF: predicated region fallthrough
CT: control target
= control target key end

     0   :  { %12 = vsyncpa [#allocation3], 0  ;;  %s566_s0 = inlined_call_operand.hbm [shape: f32[16,32], index: 0, kind: input, shape index: {}]   ;;  %s567_s1 = inlined_call_operand.hbm [shape: f32[32,32], index: 1, kind: input, shape index: {}]   ;;  %s568_s2 = inlined_call_operand.vmem [shape: f32[1,32], index: 2, kind: input, shape index: {}]   ;;  %s569_s3 = inlined_call_operand.vmem [shape: f32[1,32], index: 3, kind: input, shape index: {}]   ;;  %s570_s4 = inlined_call_operand.vmem [shape: f32[1,32], index: 4, kind: input, shape index: {}]   ;;  %s571_s5 = inlined_call_operand.hbm [shape: f32[32,128], index: 5, kind: input, shape index: {}]   ;;  %s572_s6 = inlined_call_operand.vmem [shape: f32[1,128], index: 6, kind: input, shape index: {}]   ;;  %s573_s7 = inlined_call_operand.hbm [shape: f32[16,128], index: 7, kind: output, shape index: {}]  }
   0x1   :  { %13 = vsyncpa [#allocation6], 0 }
   0x2   :  { %14 = vsyncpa [#allocation4], 0  ;;  %s476_s24 = smov [#allocation5]   ;;  %s477_s26 = smov [#allocation2]  }
   0x3   :  { %s32_s25 = sshll.u32 %s476_s24, 4  ;;  %s20_s27 = sshll.u32 %s477_s26, 4  ;;  %s33_s25 = int_to_ptr.vmem [resolvable:$true] %s32_s25  ;;  %s21_s27 = int_to_ptr.vmem [resolvable:$true] %s20_s27 }
   0x4   :  { %s398_s28 = scalar_lea.vmem %s33_s25, 512  ;;  %p403_p1 = scmp.lt.s32.totalorder %s33_s25, %s33_s25 }
   0x5   :  { %p399_p0 = scmp.ne.s32.totalorder %s33_s25, %s398_s28  ;;  %p404_p2 = scmp.lt.s32.totalorder %s398_s28, %s398_s28 }
   0x7   :  { %p405_p3 = por %p404_p2, %p403_p1 }
   0x9   :  { %p406_p4 = pnand %p405_p3, %p399_p0 }
   0xb   :  { %409 = shalt.err (!%p406_p4)
}
   0xc   :  { %s478_s29 = smov 128   ;;  %s479_s30 = smov 8  }
   0xd   :  { %38 = dma.hbm_to_vmem [thread:$0]  %s567_s1, 512, %s33_s25, [#allocation6], %s478_s29, %s478_s29, %s479_s30  }
   0xe   :  { %s418_s10 = scalar_lea.vmem %s21_s27, 256  ;;  %p423_p6 = scmp.lt.s32.totalorder %s21_s27, %s21_s27 }
   0xf   :  { %p419_p5 = scmp.ne.s32.totalorder %s21_s27, %s418_s10  ;;  %p424_p7 = scmp.lt.s32.totalorder %s418_s10, %s418_s10 }
  0x11   :  { %p425_p8 = por %p424_p7, %p423_p6 }
  0x13   :  { %p426_p9 = pnand %p425_p8, %p419_p5 }
  0x15   :  { %429 = shalt.err (!%p426_p9)
}
  0x16   :  { %26 = dma.hbm_to_vmem [thread:$0]  %s566_s0, 256, %s21_s27, [#allocation3], %s478_s29, %s478_s29, %s479_s30  }
  0x17   :  { %s480_s13 = smov [#allocation7]  }
  0x18   :  { %s50_s14 = sshll.u32 %s480_s13, 4  ;;  %s51_s14 = int_to_ptr.vmem [resolvable:$true] %s50_s14 }
  0x19   :  { %s438_s15 = scalar_lea.vmem %s51_s14, 512  ;;  %p443_p11 = scmp.lt.s32.totalorder %s51_s14, %s51_s14 }
  0x1a   :  { %p439_p10 = scmp.ne.s32.totalorder %s51_s14, %s438_s15  ;;  %p444_p12 = scmp.lt.s32.totalorder %s438_s15, %s438_s15 }
  0x1c   :  { %p445_p13 = por %p444_p12, %p443_p11 }
  0x1e   :  { %p446_p0 = pnand %p445_p13, %p439_p10 }
  0x20   :  { %449 = shalt.err (!%p446_p0)
}
  0x21   :  { %56 = dma.hbm_to_vmem [thread:$0]  %s571_s5, 512, %s51_s14, [#allocation6], %s478_s29, %s478_s29, %s479_s30  }
  0x22   :  { %470 = dma.done.wait [#allocation3], 256  }
  0x23   :  { %471 = vsyncadd [#allocation3], 4294967040 }
  0x24   :  { %472 = dma.done.wait [#allocation6], 1024  }
  0x25   :  { %473 = vsyncadd [#allocation6], 4294966272  ;;  %vm81_vm0 = vcmask 261120   ;;  %v73_v0 = vld [vmem:[#allocation5 + $0x18] sm:$0xff]  ;;  %v72_v1 = vld [vmem:[#allocation5 + $0x10] sm:$0xff]  ;;  %v199_v43 = vlaneseq }
  0x26   :  { %356 = vmatprep.subr.mxu0 %v73_v0  ;;  %v68_v2 = vld [vmem:[#allocation2] sm:$0xff]  ;;  %v71_v3 = vld [vmem:[#allocation5 + $0x8] sm:$0xff]  ;;  %v70_v4 = vld [vmem:[#allocation5] sm:$0xff] }
  0x27   :  { %357 = vmatpush3.msra.mxu0 %v73_v0  ;;  %364 = vmatprep.mubr.msk.f32.mxu0 %vm81_vm0, %v68_v2  ;;  %v69_v5 = vld [vmem:[#allocation2 + $0x8] sm:$0xff]  ;;  %v216_v7 = vld [vmem:[#allocation7 + $0x10] sm:$0xff]  ;;  %v215_v8 = vld [vmem:[#allocation7 + $0x8] sm:$0xff]  ;;  %v200_v44 = vshrl.u32 %v199_v43, 7 }
  0x28   :  { %358 = vmatprep.subr.mxu0 %v72_v1  ;;  %v217_v6 = vld [vmem:[#allocation7 + $0x18] sm:$0xff]  ;;  %v214_v9 = vld [vmem:[#allocation7] sm:$0xff]  ;;  %v338_v10 = vld [vmem:[%s568_s2] ss:$0 sm:$0xff] }
  0x29   :  { %359 = vmatpush3.msra.mxu0 %v72_v1  ;;  %367 = vmatprep.subr.mxu1 %v217_v6  ;;  %v191_v45 = vld [vmem:[%s569_s3] sm:$0x1]  ;;  %v201_v46 = vsub.s32 0, %v200_v44 }
  0x2a   :  { %360 = vmatprep.subr.mxu0 %v71_v3  ;;  %368 = vmatpush3.msra.mxu1 %v217_v6  ;;  %v195_v49 = vld [vmem:[%s570_s4] sm:$0x1]  ;;  %s481_s4 = smov [#allocation8]  }
  0x2b   :  { %361 = vmatpush3.msra.mxu0 %v71_v3  ;;  %369 = vmatprep.subr.mxu1 %v216_v7  ;;  %v341_v59 = vld [vmem:[%s572_s6] ss:$0 sm:$0xff]  ;;  %s325_s21 = sshll.u32 %s481_s4, 4  ;;  %s326_s21 = int_to_ptr.vmem [resolvable:$true] %s325_s21 }
  0x2c   :  { %362 = vmatprep.subr.mxu0 %v70_v4  ;;  %370 = vmatpush3.msra.mxu1 %v216_v7  ;;  %s450_s6 = scalar_lea.vmem %s326_s21, 256  ;;  %p455_p2 = scmp.lt.s32.totalorder %s326_s21, %s326_s21 }
  0x2d   :  { %363 = vmatpush3.msra.mxu0 %v70_v4  ;;  %371 = vmatprep.subr.mxu1 %v215_v8  ;;  %p451_p1 = scmp.ne.s32.totalorder %s326_s21, %s450_s6  ;;  %p456_p3 = scmp.lt.s32.totalorder %s450_s6, %s450_s6 }
  0x2e   :  { %365 = vmatmul.mubr.msk.f32.vlgmr.msra.gmra.mxu0 %vm81_vm0, %v69_v5  ;;  %372 = vmatpush3.msra.mxu1 %v215_v8 }
  0x2f   :  { %373 = vmatprep.subr.mxu1 %v214_v9  ;;  %p457_p4 = por %p456_p3, %p455_p2 }
  0x30   :  { %374 = vmatpush3.msra.mxu1 %v214_v9 }
  0x31   :  { %p458_p5 = pnand %p457_p4, %p451_p1 }
  0xee   :  { %v366_v11 = vpop.f32.mrf.mxu0 }
  0xef   :  { %v160_v12 = vadd.f32 %v366_v11, %v338_v10 }
  0xf0   :  { %v154_v13 = vpop.f32.mrf.mxu0 }
  0xf1   :  { %v164_v14 = vmax.f32 %v160_v12, 0.0  ;;  %v155_v15 = vadd.f32 %v338_v10, %v154_v13 }
  0xf3   :  { %v177_v16 = vmul.f32 %v164_v14, %v164_v14  ;;  %v163_v17 = vmax.f32 %v155_v15, 0.0  ;;  %v166_v18 = vsel %vm81_vm0, %v164_v14, 0.0 }
  0xf5   :  { %v165_v19 = vsel %vm81_vm0, %v163_v17, 0.0  ;;  %v176_v20 = vmul.f32 %v163_v17, %v163_v17  ;;  %v179_v22 = vsel %vm81_vm0, %v177_v16, 0.0 }
  0xf6   :  { %v167_v21 = vadd.f32 %v166_v18, %v165_v19 }
  0xf7   :  { %v178_v23 = vsel %vm81_vm0, %v176_v20, 0.0 }
  0xf8   :  { %v168_v24 = vrot.slane %v167_v21, 4  ;;  %v180_v25 = vadd.f32 %v179_v22, %v178_v23 }
  0xfa   :  { %v169_v26 = vadd.f32 %v168_v24, %v167_v21  ;;  %v181_v27 = vrot.slane %v180_v25, 4 }
  0xfc   :  { %v170_v28 = vrot.slane %v169_v26, 2  ;;  %v182_v29 = vadd.f32 %v181_v27, %v180_v25 }
  0xfe   :  { %v171_v30 = vadd.f32 %v170_v28, %v169_v26  ;;  %v183_v31 = vrot.slane %v182_v29, 2 }
 0x100   :  { %v184_v32 = vadd.f32 %v183_v31, %v182_v29  ;;  %v172_v33 = vrot.slane %v171_v30, 1 }
 0x102   :  { %v185_v34 = vrot.slane %v184_v32, 1  ;;  %v173_v35 = vadd.f32 %v172_v33, %v171_v30 }
 0x104   :  { %v186_v36 = vadd.f32 %v185_v34, %v184_v32  ;;  %v175_v37 = vmul.f32 0.0625, %v173_v35 }
 0x106   :  { %v187_v38 = vmul.f32 0.0625, %v186_v36  ;;  %v188_v39 = vmul.f32 %v175_v37, %v175_v37 }
 0x108   :  { %v189_v40 = vsub.f32 %v187_v38, %v188_v39 }
 0x10a   :  { %v190_v41 = vmax.f32 %v189_v40, 0.0 }
 0x10c   :  { %v192_v42 = vadd.f32 1e-05, %v190_v41 }
 0x10e   :  { %384 = vrsqrt.f32 %v192_v42 }
 0x11b   :  { %v385_v47 = vpop.eup %384 }
 0x11c   :  { %v194_v48 = vmul.f32 %v385_v47, %v191_v45 }
 0x11e   :  { %v196_v50 = vmul.f32 %v194_v48, %v175_v37  ;;  %v202_v51 = vrot.slane %v194_v48, %v201_v46 }
 0x120   :  { %v197_v52 = vsub.f32 %v195_v49, %v196_v50  ;;  %v204_v53 = vmul.f32 %v202_v51, %v163_v17  ;;  %v205_v54 = vmul.f32 %v202_v51, %v164_v14 }
 0x122   :  { %v210_v55 = vrot.slane %v197_v52, %v201_v46 }
 0x124   :  { %v212_v56 = vadd.f32 %v210_v55, %v204_v53  ;;  %v213_v57 = vadd.f32 %v210_v55, %v205_v54 }
 0x126   :  { %375 = vmatprep.mubr.msk.f32.mxu1 %vm81_vm0, %v212_v56 }
 0x127   :  { %376 = vmatmul.mubr.msk.f32.vlgmr.msra.gmra.mxu1 %vm81_vm0, %v213_v57 }
 0x1e7   :  { %v377_v58 = vpop.f32.mrf.mxu1 }
 0x1e8   :  { %v303_v62 = vadd.f32 %v377_v58, %v341_v59 }
 0x1e9   :  { %v297_v60 = vpop.f32.mrf.mxu1 }
 0x1ea   :  { %v298_v61 = vadd.f32 %v341_v59, %v297_v60  ;;  %v307_v0 = vmul.f32 %v303_v62, %v303_v62 }
 0x1ec   :  { %v306_v63 = vmul.f32 %v298_v61, %v298_v61 }
 0x1ee   :  { %308 = vadd.xlane.f32.xlu0 %v306_v63 }
 0x1f2   :  { %310 = vadd.xlane.f32.xlu0 %v307_v0 }
 0x277   :  { %v309_v1 = vpop.xlane.xlu0 %308 }
 0x278   :  { %v312_v2 = vmax.f32 %v309_v1, 1e-24 }
 0x27a   :  { %386 = vrsqrt.f32 %v312_v2 }
 0x27b   :  { %v311_v3 = vpop.xlane.xlu0 %310 }
 0x27c   :  { %v313_v4 = vmax.f32 %v311_v3, 1e-24 }
 0x27e   :  { %388 = vrsqrt.f32 %v313_v4 }
 0x287   :  { %v387_v5 = vpop.eup %386 }
 0x288   :  { %v316_v6 = vmul.f32 %v387_v5, %v298_v61 }
 0x28a   :  { %318 = vst [vmem:[#allocation8] sm:$0xff] %v316_v6 }
 0x28b   :  { %v389_v7 = vpop.eup %388 }
 0x28c   :  { %v317_v8 = vmul.f32 %v389_v7, %v303_v62 }
 0x28e   :  { %319 = vst [vmem:[#allocation8 + $0x8] sm:$0xff] %v317_v8 }
 0x28f   :  { %461 = shalt.err (!%p458_p5)
}
 0x290   :  { %331 = dma.vmem_to_hbm [thread:$0]  %s326_s21, 256, %s573_s7, [#allocation4], %s478_s29, %s478_s29, %s479_s30  }
 0x291   :  { %474 = dma.done.wait [#allocation4], 256  }
 0x292   :  { %475 = vsyncadd [#allocation4], 4294967040 }
 0x293   :  { %335 = vsyncpa [#allocation3], 1 }
 0x294   :  { %336 = vsyncpa [#allocation6], 1 }
 0x295   :  { %337 = vsyncpa [#allocation4], 1 }

</bundles_post_ra>
